<compile_context>
chip_gen: v7x
topology: tpu7x:2x2x1
jax: 0.10.0
libtpu: 0.0.40
codegen_flags: <defaults>
</compile_context>

<pallas_src>
import functools

import jax
import jax.numpy as jnp
from jax.experimental import pallas as pl
from jax.experimental.pallas import tpu as pltpu


def _gru_cell_kernel(x_ref, h_ref, wx_ref, wh_ref, bx_ref, bh_ref, o_ref,
                     *, hidden_size):
    H = hidden_size

    x = x_ref[...]                      # (Bt, Kx) native dtype -> MXU
    h = h_ref[...]                      # (Bt, H)

    # Two fused, lane-dense (N = 3H) matmuls; accumulate in f32.
    gx = jnp.dot(x, wx_ref[...], preferred_element_type=jnp.float32)
    gx = gx + bx_ref[...].astype(jnp.float32)
    gh = jnp.dot(h, wh_ref[...], preferred_element_type=jnp.float32)
    gh = gh + bh_ref[...].astype(jnp.float32)

    # Static per-gate slices of the in-register (Bt, 3H) slabs.
    i_r, i_i, i_n = gx[:, 0:H], gx[:, H:2 * H], gx[:, 2 * H:3 * H]
    h_r, h_i, h_n = gh[:, 0:H], gh[:, H:2 * H], gh[:, 2 * H:3 * H]

    resetgate = jax.nn.sigmoid(i_r + h_r)
    inputgate = jax.nn.sigmoid(i_i + h_i)
    newgate = jnp.tanh(i_n + resetgate * h_n)

    hf = h.astype(jnp.float32)
    hy = newgate + inputgate * (hf - newgate)   # == newgate + ig*(h - newgate)
    o_ref[...] = hy.astype(o_ref.dtype)


def prepare_gru_params(w_x2h, b_x2h, w_h2h, b_h2h):
    """One-time repack of nn.Linear params into the kernel layout.

    w_x2h: (3H, input_size), w_h2h: (3H, H), biases: (3H,)
    Returns wx (input_size, 3H), wh (H, 3H), bx (1, 3H), bh (1, 3H).
    Call this ONCE per model, not per timestep.
    """
    H3 = w_x2h.shape[0]
    wx = jnp.asarray(w_x2h).T
    wh = jnp.asarray(w_h2h).T
    bx = jnp.asarray(b_x2h).reshape(1, H3)
    bh = jnp.asarray(b_h2h).reshape(1, H3)
    return wx, wh, bx, bh


def _round_up(v, m):
    return ((v + m - 1) // m) * m


@jax.jit
def gru_cell_forward(x, hidden, wx, wh, bx, bh):
    """GRUCell forward.

    x:      (..., input_size) -> flattened to (B, input_size) like x.view(-1, ...)
    hidden: (B, H)
    wx/wh/bx/bh: output of prepare_gru_params().
    """
    H = hidden.shape[-1]
    x2 = x.reshape(-1, x.shape[-1])
    B, Kx = x2.shape

    # Batch tile: multiple of 8 sublanes, capped at 256 rows so x/h/out tiles
    # stay small enough to double-buffer comfortably (incl. v7x's 64 MiB VMEM).
    B_tile = min(256, _round_up(max(B, 1), 8))
    B_pad = _round_up(B, B_tile)
    if B_pad != B:
        x2 = jnp.pad(x2, ((0, B_pad - B), (0, 0)))
        hidden_p = jnp.pad(hidden, ((0, B_pad - B), (0, 0)))
    else:
        hidden_p = hidden

    grid = (B_pad // B_tile,)
    kernel = functools.partial(_gru_cell_kernel, hidden_size=H)

    out = pl.pallas_call(
        kernel,
        out_shape=jax.ShapeDtypeStruct((B_pad, H), hidden.dtype),
        grid=grid,
        in_specs=[
            pl.BlockSpec((B_tile, Kx), lambda i: (i, 0)),     # x tile (pipelined)
            pl.BlockSpec((B_tile, H), lambda i: (i, 0)),      # h tile (pipelined)
            pl.BlockSpec((Kx, 3 * H), lambda i: (0, 0)),      # Wx: VMEM-resident
            pl.BlockSpec((H, 3 * H), lambda i: (0, 0)),       # Wh: VMEM-resident
            pl.BlockSpec((1, 3 * H), lambda i: (0, 0)),       # bx
            pl.BlockSpec((1, 3 * H), lambda i: (0, 0)),       # bh
        ],
        out_specs=pl.BlockSpec((B_tile, H), lambda i: (i, 0)),
        compiler_params=pltpu.CompilerParams(
            dimension_semantics=("parallel",)),               # 2 TCs on v7x
    )(x2, hidden_p, wx, wh, bx, bh)

    return out[:B]


def _reference_forward(x, hidden, w_x2h, b_x2h, w_h2h, b_h2h, hidden_size):
    """Pure-JAX reference matching the PyTorch module semantics."""
    H = hidden_size
    x2 = x.reshape(-1, x.shape[-1])
    gate_x = x2 @ w_x2h.T + b_x2h
    gate_h = hidden @ w_h2h.T + b_h2h
    i_r, i_i, i_n = gate_x[:, :H], gate_x[:, H:2 * H], gate_x[:, 2 * H:]
    h_r, h_i, h_n = gate_h[:, :H], gate_h[:, H:2 * H], gate_h[:, 2 * H:]
    resetgate = jax.nn.sigmoid(i_r + h_r)
    inputgate = jax.nn.sigmoid(i_i + h_i)
    newgate = jnp.tanh(i_n + resetgate * h_n)
    return newgate + inputgate * (hidden - newgate)


if __name__ == "__main__":
    input_size = 16
    hidden_size = 32
    batch = 8

    key = jax.random.PRNGKey(0)
    kx, kh, kw1, kb1, kw2, kb2 = jax.random.split(key, 6)

    # Deterministic init mirroring reset_parameters(): uniform(-std, std),
    # std = 1/sqrt(hidden_size).
    std = 1.0 / jnp.sqrt(jnp.float32(hidden_size))
    w_x2h = jax.random.uniform(kw1, (3 * hidden_size, input_size),
                               jnp.float32, -std, std)
    b_x2h = jax.random.uniform(kb1, (3 * hidden_size,), jnp.float32, -std, std)
    w_h2h = jax.random.uniform(kw2, (3 * hidden_size, hidden_size),
                               jnp.float32, -std, std)
    b_h2h = jax.random.uniform(kb2, (3 * hidden_size,), jnp.float32, -std, std)

    x = jax.random.normal(kx, (batch, input_size), jnp.float32)
    hidden = jax.random.normal(kh, (batch, hidden_size), jnp.float32)

    # One-time parameter repack (outside the per-step path).
    wx, wh, bx, bh = prepare_gru_params(w_x2h, b_x2h, w_h2h, b_h2h)

    hy = gru_cell_forward(x, hidden, wx, wh, bx, bh)
    hy = jax.block_until_ready(hy)

    ref = _reference_forward(x, hidden, w_x2h, b_x2h, w_h2h, b_h2h, hidden_size)
    assert hy.shape == (batch, hidden_size)
    assert jnp.allclose(hy, ref, atol=1e-5, rtol=1e-5), "mismatch vs reference"

    print("KERNEL_OK")
</pallas_src>

<mosaic_0001>
module attributes {stable_mosaic.version = 11 : i64} {
  func.func @_gru_cell_kernel(%arg0: i32, %arg1: memref<8x16xf32, #tpu.memory_space<vmem>>, %arg2: memref<8x32xf32, #tpu.memory_space<vmem>>, %arg3: memref<16x96xf32, #tpu.memory_space<vmem>>, %arg4: memref<32x96xf32, #tpu.memory_space<vmem>>, %arg5: memref<1x96xf32, #tpu.memory_space<vmem>>, %arg6: memref<1x96xf32, #tpu.memory_space<vmem>>, %arg7: memref<8x32xf32, #tpu.memory_space<vmem>>) attributes {dimension_semantics = [#tpu.dimension_semantics<parallel>], iteration_bounds = array<i64: 1>, scalar_prefetch = 0 : i64, scratch_operands = 0 : i64, tpu.core_type = #tpu.core_type<tc>, window_params = [{transform_indices = @transform_0, window_bounds = array<i64: 8, 16>}, {transform_indices = @transform_1, window_bounds = array<i64: 8, 32>}, {pipeline_mode = #tpu.pipeline_mode<synchronous>, transform_indices = @transform_2, window_bounds = array<i64: 16, 96>}, {pipeline_mode = #tpu.pipeline_mode<synchronous>, transform_indices = @transform_3, window_bounds = array<i64: 32, 96>}, {pipeline_mode = #tpu.pipeline_mode<synchronous>, transform_indices = @transform_4, window_bounds = array<i64: 1, 96>}, {pipeline_mode = #tpu.pipeline_mode<synchronous>, transform_indices = @transform_5, window_bounds = array<i64: 1, 96>}, {transform_indices = @transform_6, window_bounds = array<i64: 8, 32>}]} {
    %c0 = arith.constant 0 : index
    %c0_0 = arith.constant 0 : index
    %0 = vector.load %arg1[%c0, %c0_0] : memref<8x16xf32, #tpu.memory_space<vmem>>, vector<8x16xf32>
    %c0_1 = arith.constant 0 : index
    %c0_2 = arith.constant 0 : index
    %1 = vector.load %arg2[%c0_1, %c0_2] : memref<8x32xf32, #tpu.memory_space<vmem>>, vector<8x32xf32>
    %c0_3 = arith.constant 0 : index
    %c0_4 = arith.constant 0 : index
    %2 = vector.load %arg3[%c0_3, %c0_4] : memref<16x96xf32, #tpu.memory_space<vmem>>, vector<16x96xf32>
    %cst = arith.constant dense<0.000000e+00> : vector<8x96xf32>
    %3 = tpu.matmul %0, %2, %cst {dimension_numbers = #tpu.dot_dimension_numbers<[1], [0], [0], [1], [0, 0, 1, 1], [], []>} : vector<8x16xf32>, vector<16x96xf32>, vector<8x96xf32> -> vector<8x96xf32>
    %c0_5 = arith.constant 0 : index
    %c0_6 = arith.constant 0 : index
    %4 = vector.load %arg5[%c0_5, %c0_6] : memref<1x96xf32, #tpu.memory_space<vmem>>, vector<1x96xf32>
    %5 = vector.broadcast %4 : vector<1x96xf32> to vector<8x96xf32>
    %6 = arith.addf %3, %5 : vector<8x96xf32>
    %c0_7 = arith.constant 0 : index
    %c0_8 = arith.constant 0 : index
    %7 = vector.load %arg4[%c0_7, %c0_8] : memref<32x96xf32, #tpu.memory_space<vmem>>, vector<32x96xf32>
    %cst_9 = arith.constant dense<0.000000e+00> : vector<8x96xf32>
    %8 = tpu.matmul %1, %7, %cst_9 {dimension_numbers = #tpu.dot_dimension_numbers<[1], [0], [0], [1], [0, 0, 1, 1], [], []>} : vector<8x32xf32>, vector<32x96xf32>, vector<8x96xf32> -> vector<8x96xf32>
    %c0_10 = arith.constant 0 : index
    %c0_11 = arith.constant 0 : index
    %9 = vector.load %arg6[%c0_10, %c0_11] : memref<1x96xf32, #tpu.memory_space<vmem>>, vector<1x96xf32>
    %10 = vector.broadcast %9 : vector<1x96xf32> to vector<8x96xf32>
    %11 = arith.addf %8, %10 : vector<8x96xf32>
    %12 = vector.extract_strided_slice %6 {offsets = [0, 0], sizes = [8, 32], strides = [1, 1]} : vector<8x96xf32> to vector<8x32xf32>
    %13 = vector.extract_strided_slice %6 {offsets = [0, 32], sizes = [8, 32], strides = [1, 1]} : vector<8x96xf32> to vector<8x32xf32>
    %14 = vector.extract_strided_slice %6 {offsets = [0, 64], sizes = [8, 32], strides = [1, 1]} : vector<8x96xf32> to vector<8x32xf32>
    %15 = vector.extract_strided_slice %11 {offsets = [0, 0], sizes = [8, 32], strides = [1, 1]} : vector<8x96xf32> to vector<8x32xf32>
    %16 = vector.extract_strided_slice %11 {offsets = [0, 32], sizes = [8, 32], strides = [1, 1]} : vector<8x96xf32> to vector<8x32xf32>
    %17 = vector.extract_strided_slice %11 {offsets = [0, 64], sizes = [8, 32], strides = [1, 1]} : vector<8x96xf32> to vector<8x32xf32>
    %18 = arith.addf %12, %15 : vector<8x32xf32>
    %19 = arith.negf %18 : vector<8x32xf32>
    %20 = math.exp %19 : vector<8x32xf32>
    %cst_12 = arith.constant 1.000000e+00 : f32
    %21 = vector.broadcast %cst_12 : f32 to vector<8x32xf32>
    %22 = arith.addf %21, %20 : vector<8x32xf32>
    %23 = arith.divf %21, %22 : vector<8x32xf32>
    %24 = arith.addf %13, %16 : vector<8x32xf32>
    %25 = arith.negf %24 : vector<8x32xf32>
    %26 = math.exp %25 : vector<8x32xf32>
    %cst_13 = arith.constant 1.000000e+00 : f32
    %27 = vector.broadcast %cst_13 : f32 to vector<8x32xf32>
    %28 = arith.addf %27, %26 : vector<8x32xf32>
    %29 = arith.divf %27, %28 : vector<8x32xf32>
    %30 = arith.mulf %23, %17 : vector<8x32xf32>
    %31 = arith.addf %14, %30 : vector<8x32xf32>
    %32 = math.tanh %31 : vector<8x32xf32>
    %33 = arith.subf %1, %32 : vector<8x32xf32>
    %34 = arith.mulf %29, %33 : vector<8x32xf32>
    %35 = arith.addf %32, %34 : vector<8x32xf32>
    %c0_14 = arith.constant 0 : index
    %c0_15 = arith.constant 0 : index
    %36 = vector.load %arg7[%c0_14, %c0_15] : memref<8x32xf32, #tpu.memory_space<vmem>>, vector<8x32xf32>
    tpu.vector_store %arg7[%c0_14, %c0_15], %35 {strides = array<i32>} : memref<8x32xf32, #tpu.memory_space<vmem>>, vector<8x32xf32>,
    return
  }
  func.func @transform_0(%arg0: i32) -> (i32, i32) {
    %c0_i32 = arith.constant 0 : i32
    %c0_i32_0 = arith.constant 0 : i32
    return %arg0, %c0_i32 : i32, i32
  }
  func.func @transform_1(%arg0: i32) -> (i32, i32) {
    %c0_i32 = arith.constant 0 : i32
    %c0_i32_0 = arith.constant 0 : i32
    return %arg0, %c0_i32 : i32, i32
  }
  func.func @transform_2(%arg0: i32) -> (i32, i32) {
    %c0_i32 = arith.constant 0 : i32
    %c0_i32_0 = arith.constant 0 : i32
    %c0_i32_1 = arith.constant 0 : i32
    return %c0_i32, %c0_i32_0 : i32, i32
  }
  func.func @transform_3(%arg0: i32) -> (i32, i32) {
    %c0_i32 = arith.constant 0 : i32
    %c0_i32_0 = arith.constant 0 : i32
    %c0_i32_1 = arith.constant 0 : i32
    return %c0_i32, %c0_i32_0 : i32, i32
  }
  func.func @transform_4(%arg0: i32) -> (i32, i32) {
    %c0_i32 = arith.constant 0 : i32
    %c0_i32_0 = arith.constant 0 : i32
    %c0_i32_1 = arith.constant 0 : i32
    return %c0_i32, %c0_i32_0 : i32, i32
  }
  func.func @transform_5(%arg0: i32) -> (i32, i32) {
    %c0_i32 = arith.constant 0 : i32
    %c0_i32_0 = arith.constant 0 : i32
    %c0_i32_1 = arith.constant 0 : i32
    return %c0_i32, %c0_i32_0 : i32, i32
  }
  func.func @transform_6(%arg0: i32) -> (i32, i32) {
    %c0_i32 = arith.constant 0 : i32
    %c0_i32_0 = arith.constant 0 : i32
    return %arg0, %c0_i32 : i32, i32
  }
}

</mosaic_0001>

<bundles_post_ra>
// kernel: gru_cell_forward.1
= control target key start
LH: loop header
LB: loop body
LE: loop exit
PB: predicated region body
PF: predicated region fallthrough
CT: control target
= control target key end

     0   :  { %11 = vsyncpa [#allocation3], 0  ;;  %s591_s0 = inlined_call_operand.hbm [shape: f32[8,16], index: 0, kind: input, shape index: {}]   ;;  %s592_s1 = inlined_call_operand.hbm [shape: f32[8,32], index: 1, kind: input, shape index: {}]   ;;  %s593_s2 = inlined_call_operand.hbm [shape: f32[16,96], index: 2, kind: input, shape index: {}]   ;;  %s594_s3 = inlined_call_operand.hbm [shape: f32[32,96], index: 3, kind: input, shape index: {}]   ;;  %s595_s4 = inlined_call_operand.vmem [shape: f32[1,96], index: 4, kind: input, shape index: {}]   ;;  %s596_s5 = inlined_call_operand.vmem [shape: f32[1,96], index: 5, kind: input, shape index: {}]   ;;  %s597_s6 = inlined_call_operand.hbm [shape: f32[8,32], index: 6, kind: output, shape index: {}]  }
   0x1   :  { %12 = vsyncpa [#allocation6], 0 }
   0x2   :  { %13 = vsyncpa [#allocation9], 0 }
   0x3   :  { %14 = vsyncpa [#allocation4], 0  ;;  %s476_s21 = smov [#allocation5]   ;;  %s477_s23 = smov [#allocation2]  }
   0x4   :  { %s31_s22 = sshll.u32 %s476_s21, 4  ;;  %s21_s24 = sshll.u32 %s477_s23, 4  ;;  %s32_s22 = int_to_ptr.vmem [resolvable:$true] %s31_s22  ;;  %s22_s24 = int_to_ptr.vmem [resolvable:$true] %s21_s24 }
   0x5   :  { %s358_s27 = scalar_lea.hbm %s592_s1, 128 }
   0x6   :  { %p359_p0 = scmp.ne.s32.totalorder %s592_s1, %s358_s27  ;;  %p362_p1 = scmp.lt.u32.totalorder %s358_s27, %s592_s1 }
   0x8   :  { %p364_p2 = pnand %p362_p1, %p359_p0 }
   0xa   :  { %367 = shalt.err (!%p364_p2)
}
   0xb   :  { %s368_s8 = scalar_lea.vmem %s32_s22, 128  ;;  %p373_p4 = scmp.lt.s32.totalorder %s32_s22, %s32_s22 }
   0xc   :  { %p369_p3 = scmp.ne.s32.totalorder %s32_s22, %s368_s8  ;;  %p374_p5 = scmp.lt.s32.totalorder %s368_s8, %s368_s8 }
   0xe   :  { %p375_p6 = por %p374_p5, %p373_p4 }
  0x10   :  { %p376_p7 = pnand %p375_p6, %p369_p3 }
  0x12   :  { %379 = shalt.err (!%p376_p7)
}
  0x13   :  { %34 = dma.hbm_to_vmem [thread:$0]  %s592_s1, 128, %s32_s22, [#allocation6]  }
  0x14   :  { %s380_s13 = scalar_lea.hbm %s591_s0, 128 }
  0x15   :  { %p381_p8 = scmp.ne.s32.totalorder %s591_s0, %s380_s13  ;;  %p384_p9 = scmp.lt.u32.totalorder %s380_s13, %s591_s0 }
  0x17   :  { %p386_p10 = pnand %p384_p9, %p381_p8 }
  0x19   :  { %389 = shalt.err (!%p386_p10)
}
  0x1a   :  { %s390_s18 = scalar_lea.vmem %s22_s24, 128  ;;  %p395_p12 = scmp.lt.s32.totalorder %s22_s24, %s22_s24 }
  0x1b   :  { %p391_p11 = scmp.ne.s32.totalorder %s22_s24, %s390_s18  ;;  %p396_p13 = scmp.lt.s32.totalorder %s390_s18, %s390_s18 }
  0x1d   :  { %p397_p0 = por %p396_p13, %p395_p12 }
  0x1f   :  { %p398_p1 = pnand %p397_p0, %p391_p11 }
  0x21   :  { %401 = shalt.err (!%p398_p1)
}
  0x22   :  { %24 = dma.hbm_to_vmem [thread:$0]  %s591_s0, 128, %s22_s24, [#allocation3]  }
  0x23   :  { %s478_s20 = smov [#allocation7]   ;;  %s402_s25 = scalar_lea.hbm %s593_s2, 256 }
  0x24   :  { %s40_s21 = sshll.u32 %s478_s20, 4  ;;  %p403_p2 = scmp.ne.s32.totalorder %s593_s2, %s402_s25  ;;  %s41_s21 = int_to_ptr.vmem [resolvable:$true] %s40_s21 }
  0x25   :  { %p406_p3 = scmp.lt.u32.totalorder %s402_s25, %s593_s2 }
  0x27   :  { %p408_p4 = pnand %p406_p3, %p403_p2 }
  0x29   :  { %411 = shalt.err (!%p408_p4)
}
  0x2a   :  { %s412_s30 = scalar_lea.vmem %s41_s21, 256  ;;  %p417_p6 = scmp.lt.s32.totalorder %s41_s21, %s41_s21 }
  0x2b   :  { %p413_p5 = scmp.ne.s32.totalorder %s41_s21, %s412_s30  ;;  %p418_p7 = scmp.lt.s32.totalorder %s412_s30, %s412_s30 }
  0x2d   :  { %p419_p8 = por %p418_p7, %p417_p6 }
  0x2f   :  { %p420_p9 = pnand %p419_p8, %p413_p5 }
  0x31   :  { %423 = shalt.err (!%p420_p9)
}
  0x32   :  { %s479_s0 = smov 128   ;;  %s480_s24 = smov 8  }
  0x33   :  { %46 = dma.hbm_to_vmem [thread:$0]  %s593_s2, 256, %s41_s21, [#allocation6], %s479_s0, %s479_s0, %s480_s24  }
  0x34   :  { %s481_s9 = smov [#allocation8]   ;;  %s424_s13 = scalar_lea.hbm %s594_s3, 512 }
  0x35   :  { %s52_s10 = sshll.u32 %s481_s9, 4  ;;  %p425_p10 = scmp.ne.s32.totalorder %s594_s3, %s424_s13  ;;  %s53_s10 = int_to_ptr.vmem [resolvable:$true] %s52_s10 }
  0x36   :  { %p428_p11 = scmp.lt.u32.totalorder %s424_s13, %s594_s3 }
  0x38   :  { %p430_p12 = pnand %p428_p11, %p425_p10 }
  0x3a   :  { %433 = shalt.err (!%p430_p12)
}
  0x3b   :  { %s434_s18 = scalar_lea.vmem %s53_s10, 512  ;;  %p439_p0 = scmp.lt.s32.totalorder %s53_s10, %s53_s10 }
  0x3c   :  { %p435_p13 = scmp.ne.s32.totalorder %s53_s10, %s434_s18  ;;  %p440_p1 = scmp.lt.s32.totalorder %s434_s18, %s434_s18 }
  0x3e   :  { %p441_p2 = por %p440_p1, %p439_p0 }
  0x40   :  { %p442_p3 = pnand %p441_p2, %p435_p13 }
  0x42   :  { %445 = shalt.err (!%p442_p3)
}
  0x43   :  { %58 = dma.hbm_to_vmem [thread:$0]  %s594_s3, 512, %s53_s10, [#allocation9], %s479_s0, %s479_s0, %s480_s24  }
  0x44   :  { %468 = dma.done.wait [#allocation3], 128  }
  0x45   :  { %469 = vsyncadd [#allocation3], 4294967168 }
  0x46   :  { %470 = dma.done.wait [#allocation6], 384  }
  0x47   :  { %471 = vsyncadd [#allocation6], 4294966912 }
  0x48   :  { %472 = dma.done.wait [#allocation9], 512  }
  0x49   :  { %473 = vsyncadd [#allocation9], 4294966784  ;;  %v482_v0 = vmov 0.0|0.0   ;;  %vm483_vm0 = vmmov 0   ;;  %v484_v1 = vmov 0.0   ;;  %v160_v2 = vld [vmem:[#allocation8] sm:$0xff] }
  0x4a   :  { %334 = vmatprep.subr.bf16.mxu1 %v482_v0  ;;  %331 = vmatprep.subr.bf16.mxu0 %v482_v0  ;;  %v161_v3 = vld [vmem:[#allocation8 + $0x8] sm:$0xff]  ;;  %v77_v4 = vld [vmem:[#allocation7] sm:$0xff]  ;;  %v78_v6 = vld [vmem:[#allocation7 + $0x8] sm:$0xff]  ;;  %vm86_vm1 = vcmask 130048   ;;  %vm171_vm2 = vcmask 261120   ;;  %s485_s20 = smov 64  }
  0x4b   :  { %317 = vmatprep.mubr.msk.f32.mxu0 %vm483_vm0, %v484_v1  ;;  %328 = vmatprep.mubr.msk.f32.mxu1 %vm483_vm0, %v484_v1  ;;  %v335_v5 = vpack.c.bf16 %v161_v3, %v160_v2  ;;  %v162_v7 = vld [vmem:[#allocation8 + $0x10] sm:$0xff]  ;;  %v163_v8 = vld [vmem:[#allocation8 + $0x18] sm:$0xff]  ;;  %v332_v9 = vpack.c.bf16 %v78_v6, %v77_v4  ;;  %v75_v11 = vld [vmem:[#allocation2] sm:$0xff] }
  0x4c   :  { %v338_v10 = vpack.c.bf16 %v163_v8, %v162_v7  ;;  %v76_v12 = vld [vmem:[#allocation5] sm:$0xff]  ;;  %v302_v14 = vld [vmem:[%s596_s5] ss:$0 sm:$0xff]  ;;  %s486_s5 = smov 32  }
  0x4d   :  { %336 = vmatpush3.bf16.msra.mxu1 %v335_v5  ;;  %333 = vmatpush3.bf16.msra.mxu0 %v332_v9  ;;  %v300_v19 = vld [vmem:[%s595_s4] ss:$0 sm:$0xff]  ;;  %s487_s4 = smov [#allocation10]  }
  0x4e   :  { %337 = vmatprep.subr.bf16.mxu1 %v482_v0  ;;  %s289_s23 = sshll.u32 %s487_s4, 4  ;;  %s290_s23 = int_to_ptr.vmem [resolvable:$true] %s289_s23 }
  0x4f   :  { %s446_s25 = scalar_lea.vmem %s290_s23, 128  ;;  %p451_p5 = scmp.lt.s32.totalorder %s290_s23, %s290_s23 }
  0x50   :  { %318 = vmatmul.mubr.msk.f32.vlgmr.msra.gmra.mrb[0].mxu0 %vm86_vm1, %v75_v11  ;;  %p447_p4 = scmp.ne.s32.totalorder %s290_s23, %s446_s25  ;;  %p452_p6 = scmp.lt.s32.totalorder %s446_s25, %s446_s25 }
  0x51   :  { %339 = vmatpush3.bf16.msra.mxu1 %v338_v10 }
  0x52   :  { %p453_p7 = por %p452_p6, %p451_p5 }
  0x54   :  { %329 = vmatmul.mubr.msk.f32.vlgmr.msra.gmra.mrb[0].mxu1 %vm171_vm2, %v76_v12  ;;  %p454_p8 = pnand %p453_p7, %p447_p4 }
 0x123   :  { %v156_v13 = vpop.f32.mrb[0].mxu0 }
 0x124   :  { %v319_v15 = vpop.f32.mrb[1].mxu0  ;;  %v157_v20 = vadd.f32 %v300_v19, %v156_v13 }
 0x127   :  { %v241_v16 = vpop.f32.mrb[0].mxu1 }
 0x128   :  { %v242_v17 = vadd.f32 %v302_v14, %v241_v16  ;;  %v330_v18 = vpop.f32.mrb[1].mxu1 }
 0x12a   :  { %253 = vrot.lane.b32.xlu0 %v242_v17, %s485_s20  ;;  %v245_v21 = vadd.f32 %v242_v17, %v157_v20 }
 0x12c   :  { %v304_v22 = vmul.f32 -1.442695, %v245_v21 }
 0x12e   :  { %352 = vpow2.f32 %v304_v22 }
 0x138   :  { %v353_v23 = vpop.eup %352 }
 0x139   :  { %v249_v24 = vadd.f32 1.0, %v353_v23 }
 0x13b   :  { %354 = vrcp.f32 %v249_v24 }
 0x145   :  { %v355_v25 = vpop.eup %354 }
 0x19c   :  { %v254_v26 = vpop.permute.xlu0 %253 }
 0x19d   :  { %v256_v27 = vmul.f32 %v355_v25, %v254_v26 }
 0x19f   :  { %258 = vrot.lane.b32.xlu0 %v256_v27, %s485_s20 }
 0x211   :  { %v259_v28 = vpop.permute.xlu0 %258 }
 0x212   :  { %v261_v29 = vadd.f32 %v259_v28, %v157_v20 }
 0x214   :  { %356 = vtanh.f32 %v261_v29 }
 0x21e   :  { %v357_v30 = vpop.eup %356 }
 0x21f   :  { %264 = vrot.lane.b32.xlu1 %v357_v30, %s485_s20 }
 0x291   :  { %v265_v31 = vpop.permute.xlu1 %264 }
 0x292   :  { %v267_v32 = vsub.f32 %v76_v12, %v265_v31 }
 0x294   :  { %269 = vrot.lane.b32.xlu1 %v267_v32, %s486_s5 }
 0x306   :  { %v270_v33 = vpop.permute.xlu1 %269 }
 0x307   :  { %v272_v34 = vmul.f32 %v355_v25, %v270_v33 }
 0x309   :  { %274 = vrot.lane.b32.xlu0 %v272_v34, %s486_s5 }
 0x37b   :  { %v275_v35 = vpop.permute.xlu0 %274 }
 0x37c   :  { %v277_v36 = vadd.f32 %v357_v30, %v275_v35 }
 0x37e   :  { %279 = vrot.lane.b32.xlu1 %v277_v36, %s485_s20 }
 0x3f0   :  { %v280_v37 = vpop.permute.xlu1 %279 }
 0x3f1   :  { %282 = vst.msk [vmem:[#allocation10] sm:$0xff] %vm171_vm2, %v280_v37 }
 0x3f2   :  { %457 = shalt.err (!%p454_p8)
}
 0x3f3   :  { %s458_s28 = scalar_lea.hbm %s597_s6, 128 }
 0x3f4   :  { %p459_p9 = scmp.ne.s32.totalorder %s597_s6, %s458_s28  ;;  %p462_p10 = scmp.lt.u32.totalorder %s458_s28, %s597_s6 }
 0x3f6   :  { %p464_p11 = pnand %p462_p10, %p459_p9 }
 0x3f8   :  { %467 = shalt.err (!%p464_p11)
}
 0x3f9   :  { %292 = dma.vmem_to_hbm [thread:$0]  %s290_s23, 128, %s597_s6, [#allocation4]  }
 0x3fa   :  { %474 = dma.done.wait [#allocation4], 128  }
 0x3fb   :  { %475 = vsyncadd [#allocation4], 4294967168 }
 0x3fc   :  { %296 = vsyncpa [#allocation3], 1 }
 0x3fd   :  { %297 = vsyncpa [#allocation6], 1 }
 0x3fe   :  { %298 = vsyncpa [#allocation9], 1 }
 0x3ff   :  { %299 = vsyncpa [#allocation4], 1 }

</bundles_post_ra>
